<compile_context>
chip_gen: v6e
topology: v6e:2x2x1
jax: 0.10.0
libtpu: 0.0.40
codegen_flags: <defaults>
</compile_context>

<pallas_src>
import jax
import jax.numpy as jnp
import numpy as np
from jax.experimental import pallas as pl
from jax.experimental.pallas import tpu as pltpu

IMAGE_SIZE = 16
BORDER_MASK_THRESH = 0.45
BORDER_SCALE = 16.0
ENC_LEAKY = 0.01
PRED_LEAKY = 0.01
H1 = 32   # encoder hidden
H2 = 32   # predictor hidden
REPR_DIM = 4  # incl_border_encs=True -> ball(2) + border(2)


def _leaky(x, mult):
    return jnp.where(x > 0, x, mult * x)


def balljepa_kernel(
    # data (batch on lanes)
    x_ref,      # (256, 2B) bf16 : [ball images | border images] stacked on lanes
    act_ref,    # (2, (T-1)*B) f32 : actions, step-major on lanes, PRE-scaled by 1/IMAGE_SIZE
    # fused encoders (transposed)
    w1_ref, b1_ref,     # (64, 256) bf16, (64, 1) f32
    w2_ref, b2_ref,     # (4, 64)  bf16 block-diag, (4, 1) f32
    # predictor (first layer split by input chunk: ball / border / action), transposed
    wpb_ref,    # (32, 2) f32
    wpr_ref,    # (32, 2) f32
    wpa_ref,    # (32, 2) f32
    bp1_ref,    # (32, 1) f32
    wp2_ref,    # (2, 32) f32
    bp2_ref,    # (2, 1) f32
    # output
    out_ref,    # (T*REPR_DIM, B) f32 : row t*4+f, col b  (wrapper reshapes to (T,B,4))
):
    f32 = jnp.float32
    TR, B = out_ref.shape
    T = TR // REPR_DIM
    n_steps = T - 1

    # ---- fused ball+border encoder: 2 MXU ops total, bf16 operands -----------
    h = jnp.dot(w1_ref[...], x_ref[...], preferred_element_type=f32) + b1_ref[...]
    h = _leaky(h, ENC_LEAKY)
    e = jnp.tanh(
        jnp.dot(w2_ref[...], h.astype(jnp.bfloat16), preferred_element_type=f32)
        + b2_ref[...]
    )                                                             # (4, 2B)
    # block-diag layer 2 keeps the two paths separate; cross columns are garbage.
    ball_enc = e[0:2, 0:B]        # (2, B)
    border_enc = e[2:4, B:2 * B]  # (2, B)

    # ---- precompute everything off the serial rollout chain ------------------
    acts = act_ref[...]                                                      # (2, (T-1)*B)
    act_proj = jnp.dot(wpa_ref[...], acts, preferred_element_type=f32)       # (32, (T-1)*B)
    border_proj = (jnp.dot(wpr_ref[...], border_enc, preferred_element_type=f32)
                   + bp1_ref[...])                                           # (32, B)

    hdim = wpb_ref.shape[0]
    wpb0 = jnp.broadcast_to(wpb_ref[:, 0:1], (hdim, B))          # hoisted broadcasts
    wpb1 = jnp.broadcast_to(wpb_ref[:, 1:2], (hdim, B))
    wp2 = wp2_ref[...]
    bp2 = bp2_ref[...]

    # loop-invariant per-step slices, hoisted off the chain (static offsets)
    a_list = [acts[:, t * B:(t + 1) * B] for t in range(n_steps)]
    c_list = [border_proj + act_proj[:, t * B:(t + 1) * B] for t in range(n_steps)]

    # ---- rollout: serial chain has 1 MXU dot + VPU/EUP work per step ---------
    blocks = [jnp.concatenate([ball_enc, border_enc], axis=0)]   # step 0 block, (4, B)
    for t in range(n_steps):
        # predictor layer 1 ball-part on the VPU (outer-product style), no MXU here
        p = c_list[t] + ball_enc[0:1, :] * wpb0 + ball_enc[1:2, :] * wpb1
        p = _leaky(p, PRED_LEAKY)
        mults = jax.nn.sigmoid(
            jnp.dot(wp2, p, preferred_element_type=f32) + bp2)   # (2, B)
        # ball_encodings + (1 - mults) * actions   (incl_mults=True)
        ball_enc = ball_enc + (1.0 - mults) * a_list[t]
        blocks.append(jnp.concatenate([ball_enc, border_enc], axis=0))

    # ---- single whole-slab store (no per-step / masked partial stores) -------
    out_ref[...] = jnp.concatenate(blocks, axis=0)               # (T*4, B)


def init_params(key):
    ks = iter(jax.random.split(key, 16))

    def lin(din, dout, scale=0.1):
        w = scale * jax.random.normal(next(ks), (din, dout), jnp.float32)
        b = scale * jax.random.normal(next(ks), (1, dout), jnp.float32)
        return w, b

    P = IMAGE_SIZE * IMAGE_SIZE
    params = {}
    params["we1"], params["be1"] = lin(P, H1)
    params["we2"], params["be2"] = lin(H1, 2)
    params["wb1"], params["bb1"] = lin(P, H1)
    params["wb2"], params["bb2"] = lin(H1, 2)
    params["wp1"], params["bp1"] = lin(6, H2)   # cat(ball(2), border(2), action(2))
    params["wp2"], params["bp2"] = lin(H2, 2)
    return params


def _border_mask():
    coords = jnp.arange(IMAGE_SIZE, dtype=jnp.float32) / IMAGE_SIZE
    mx = jnp.broadcast_to(coords[None, :], (IMAGE_SIZE, IMAGE_SIZE))
    my = mx.T
    mask = jnp.where(
        (jnp.abs(mx - 0.5) > BORDER_MASK_THRESH)
        | (jnp.abs(my - 0.5) > BORDER_MASK_THRESH),
        0.0,
        1.0,
    ).astype(jnp.float32)
    return mask.reshape(IMAGE_SIZE * IMAGE_SIZE)


def prepare_params(params):
    """One-time parameter prep: fold border mask/scale into wb1 (in f32, cast at
    the end), fuse the two encoders' weights (concat layer 1, block-diag layer 2),
    transpose everything for the batch-on-lanes layout, cast encoder weights to
    bf16, split wp1 into its (ball | border | action) row blocks (transposed)."""
    P = IMAGE_SIZE * IMAGE_SIZE
    mask_col = _border_mask().reshape(P, 1)

    w1f = jnp.concatenate(
        [params["we1"], (mask_col * params["wb1"]) / BORDER_SCALE], axis=1
    )                                                              # (256, 64) f32
    b1f = jnp.concatenate([params["be1"], params["bb1"]], axis=1)  # (1, 64)

    z = jnp.zeros((H1, 2), jnp.float32)
    w2f = jnp.concatenate(
        [jnp.concatenate([params["we2"], z], axis=1),
         jnp.concatenate([z, params["wb2"]], axis=1)], axis=0)     # (64, 4) block-diag
    b2f = jnp.concatenate([params["be2"], params["bb2"]], axis=1)  # (1, 4)

    wp1 = params["wp1"]
    return dict(
        w1T=w1f.T.astype(jnp.bfloat16),    # (64, 256)
        b1T=b1f.T,                         # (64, 1)
        w2T=w2f.T.astype(jnp.bfloat16),    # (4, 64)
        b2T=b2f.T,                         # (4, 1)
        wpbT=wp1[0:2].T,                   # (32, 2)
        wprT=wp1[2:4].T,                   # (32, 2)
        wpaT=wp1[4:6].T,                   # (32, 2)
        bp1T=params["bp1"].T,              # (32, 1)
        wp2T=params["wp2"].T,              # (2, 32)
        bp2T=params["bp2"].T,              # (2, 1)
    )


@jax.jit
def ball_jepa_forward(states, actions, prepped):
    """states: (B, T, 2, IMAGE_SIZE+1, IMAGE_SIZE+1)  actions: (B, T-1, 2)."""
    B, T = states.shape[0], states.shape[1]
    P = IMAGE_SIZE * IMAGE_SIZE

    # glue: crop, split channels, flatten, stack ball/border along LANES
    init_states = states[:, 0, :, :-1, :-1]                  # (B, 2, 16, 16)
    ball_img = init_states[:, 0].reshape(B, P)
    border_img = init_states[:, 1].reshape(B, P)              # raw; mask folded into w1T
    x_t = jnp.concatenate([ball_img, border_img], axis=0).T.astype(jnp.bfloat16)  # (256, 2B)

    # actions: pre-scaled by 1/IMAGE_SIZE, step-major on lanes so the kernel can
    # slice whole (2, B) chunks:  acts[c, t*B + b] == actions[b, t, c] / IMAGE_SIZE
    acts = (jnp.transpose(actions, (2, 1, 0)) * (1.0 / IMAGE_SIZE)).reshape(
        2, (T - 1) * B).astype(jnp.float32)

    args = (
        x_t, acts,
        prepped["w1T"], prepped["b1T"], prepped["w2T"], prepped["b2T"],
        prepped["wpbT"], prepped["wprT"], prepped["wpaT"],
        prepped["bp1T"], prepped["wp2T"], prepped["bp2T"],
    )

    vmem_spec = pl.BlockSpec(memory_space=pltpu.MemorySpace.VMEM)
    out2d = pl.pallas_call(
        balljepa_kernel,
        out_shape=jax.ShapeDtypeStruct((T * REPR_DIM, B), jnp.float32),
        in_specs=[vmem_spec] * len(args),
        out_specs=vmem_spec,
    )(*args)
    # wrapper-side layout plumbing back to (T, B, REPR_DIM)
    return jnp.transpose(out2d.reshape(T, REPR_DIM, B), (0, 2, 1))


def ball_jepa_ref(states, actions, params):
    """Pure-JAX reference (same math as the torch module, HIGHEST precision)."""
    B, T = states.shape[0], states.shape[1]
    P = IMAGE_SIZE * IMAGE_SIZE
    hp = jax.lax.Precision.HIGHEST

    init_states = states[:, 0, :, :-1, :-1]
    ball_img = init_states[:, 0].reshape(B, P)
    border_img = init_states[:, 1].reshape(B, P) * _border_mask()[None, :] / BORDER_SCALE

    def mlp2(x, w1, b1, w2, b2, mult, final):
        h = _leaky(jnp.dot(x, w1, precision=hp) + b1, mult)
        return final(jnp.dot(h, w2, precision=hp) + b2)

    ball_enc = mlp2(ball_img, params["we1"], params["be1"], params["we2"],
                    params["be2"], ENC_LEAKY, jnp.tanh)
    border_enc = mlp2(border_img, params["wb1"], params["bb1"], params["wb2"],
                      params["bb2"], ENC_LEAKY, jnp.tanh)

    outs = [jnp.concatenate([ball_enc, border_enc], axis=1)]
    for t in range(T - 1):
        a = actions[:, t, :] / IMAGE_SIZE
        inp = jnp.concatenate([ball_enc, border_enc, a], axis=1)
        mults = mlp2(inp, params["wp1"], params["bp1"], params["wp2"],
                     params["bp2"], PRED_LEAKY, jax.nn.sigmoid)
        ball_enc = ball_enc + (1.0 - mults) * a
        outs.append(jnp.concatenate([ball_enc, border_enc], axis=1))
    return jnp.stack(outs)


if __name__ == "__main__":
    key = jax.random.PRNGKey(0)
    k_params, k_states, k_actions = jax.random.split(key, 3)

    B, T = 8, 4
    # states mimic the torch module's input: (B, T, C=2, IMAGE_SIZE+1, IMAGE_SIZE+1)
    states = jax.random.uniform(
        k_states, (B, T, 2, IMAGE_SIZE + 1, IMAGE_SIZE + 1), jnp.float32
    )
    actions = jax.random.uniform(
        k_actions, (B, T - 1, 2), jnp.float32, minval=-2.0, maxval=2.0
    )
    params = init_params(k_params)
    prepped = prepare_params(params)   # one-time weight folding / fusion / transpose

    out = ball_jepa_forward(states, actions, prepped)
    out = jax.block_until_ready(out)

    ref = ball_jepa_ref(states, actions, params)
    # tolerance covers the intentional bf16 cast of both fused encoder layers
    np.testing.assert_allclose(np.asarray(out), np.asarray(ref), atol=2e-2, rtol=2e-2)

    assert out.shape == (T, B, REPR_DIM)
    print("KERNEL_OK")
</pallas_src>

<mosaic_0001>
module attributes {stable_mosaic.version = 11 : i64} {
  func.func @balljepa_kernel(%arg0: memref<256x16xbf16, #tpu.memory_space<vmem>>, %arg1: memref<2x24xf32, #tpu.memory_space<vmem>>, %arg2: memref<64x256xbf16, #tpu.memory_space<vmem>>, %arg3: memref<64x1xf32, #tpu.memory_space<vmem>>, %arg4: memref<4x64xbf16, #tpu.memory_space<vmem>>, %arg5: memref<4x1xf32, #tpu.memory_space<vmem>>, %arg6: memref<32x2xf32, #tpu.memory_space<vmem>>, %arg7: memref<32x2xf32, #tpu.memory_space<vmem>>, %arg8: memref<32x2xf32, #tpu.memory_space<vmem>>, %arg9: memref<32x1xf32, #tpu.memory_space<vmem>>, %arg10: memref<2x32xf32, #tpu.memory_space<vmem>>, %arg11: memref<2x1xf32, #tpu.memory_space<vmem>>, %arg12: memref<16x8xf32, #tpu.memory_space<vmem>>) attributes {dimension_semantics = [], scalar_prefetch = 0 : i64, scratch_operands = 0 : i64, tpu.core_type = #tpu.core_type<tc>} {
    %c0 = arith.constant 0 : index
    %c0_0 = arith.constant 0 : index
    %0 = vector.load %arg2[%c0, %c0_0] : memref<64x256xbf16, #tpu.memory_space<vmem>>, vector<64x256xbf16>
    %c0_1 = arith.constant 0 : index
    %c0_2 = arith.constant 0 : index
    %1 = vector.load %arg0[%c0_1, %c0_2] : memref<256x16xbf16, #tpu.memory_space<vmem>>, vector<256x16xbf16>
    %cst = arith.constant dense<0.000000e+00> : vector<64x16xf32>
    %2 = tpu.matmul %0, %1, %cst {dimension_numbers = #tpu.dot_dimension_numbers<[1], [0], [0], [1], [0, 0, 1, 1], [], []>} : vector<64x256xbf16>, vector<256x16xbf16>, vector<64x16xf32> -> vector<64x16xf32>
    %c0_3 = arith.constant 0 : index
    %c0_4 = arith.constant 0 : index
    %3 = vector.load %arg3[%c0_3, %c0_4] : memref<64x1xf32, #tpu.memory_space<vmem>>, vector<64x1xf32>
    %4 = vector.broadcast %3 : vector<64x1xf32> to vector<64x16xf32>
    %5 = arith.addf %2, %4 : vector<64x16xf32>
    %cst_5 = arith.constant 0.000000e+00 : f32
    %6 = vector.broadcast %cst_5 : f32 to vector<64x16xf32>
    %7 = arith.cmpf ogt, %5, %6 : vector<64x16xf32>
    %cst_6 = arith.constant 0.00999999977 : f32
    %8 = vector.broadcast %cst_6 : f32 to vector<64x16xf32>
    %9 = arith.mulf %8, %5 : vector<64x16xf32>
    %10 = arith.select %7, %5, %9 : vector<64x16xi1>, vector<64x16xf32>
    %c0_7 = arith.constant 0 : index
    %c0_8 = arith.constant 0 : index
    %11 = vector.load %arg4[%c0_7, %c0_8] : memref<4x64xbf16, #tpu.memory_space<vmem>>, vector<4x64xbf16>
    %12 = arith.truncf %10 : vector<64x16xf32> to vector<64x16xbf16>
    %cst_9 = arith.constant dense<0.000000e+00> : vector<4x16xf32>
    %13 = tpu.matmul %11, %12, %cst_9 {dimension_numbers = #tpu.dot_dimension_numbers<[1], [0], [0], [1], [0, 0, 1, 1], [], []>} : vector<4x64xbf16>, vector<64x16xbf16>, vector<4x16xf32> -> vector<4x16xf32>
    %c0_10 = arith.constant 0 : index
    %c0_11 = arith.constant 0 : index
    %14 = vector.load %arg5[%c0_10, %c0_11] : memref<4x1xf32, #tpu.memory_space<vmem>>, vector<4x1xf32>
    %15 = vector.broadcast %14 : vector<4x1xf32> to vector<4x16xf32>
    %16 = arith.addf %13, %15 : vector<4x16xf32>
    %17 = math.tanh %16 : vector<4x16xf32>
    %18 = vector.extract_strided_slice %17 {offsets = [0, 0], sizes = [2, 8], strides = [1, 1]} : vector<4x16xf32> to vector<2x8xf32>
    %19 = vector.extract_strided_slice %17 {offsets = [2, 8], sizes = [2, 8], strides = [1, 1]} : vector<4x16xf32> to vector<2x8xf32>
    %c0_12 = arith.constant 0 : index
    %c0_13 = arith.constant 0 : index
    %20 = vector.load %arg1[%c0_12, %c0_13] : memref<2x24xf32, #tpu.memory_space<vmem>>, vector<2x24xf32>
    %c0_14 = arith.constant 0 : index
    %c0_15 = arith.constant 0 : index
    %21 = vector.load %arg8[%c0_14, %c0_15] : memref<32x2xf32, #tpu.memory_space<vmem>>, vector<32x2xf32>
    %cst_16 = arith.constant dense<0.000000e+00> : vector<32x24xf32>
    %22 = tpu.matmul %21, %20, %cst_16 {dimension_numbers = #tpu.dot_dimension_numbers<[1], [0], [0], [1], [0, 0, 1, 1], [], []>} : vector<32x2xf32>, vector<2x24xf32>, vector<32x24xf32> -> vector<32x24xf32>
    %c0_17 = arith.constant 0 : index
    %c0_18 = arith.constant 0 : index
    %23 = vector.load %arg7[%c0_17, %c0_18] : memref<32x2xf32, #tpu.memory_space<vmem>>, vector<32x2xf32>
    %cst_19 = arith.constant dense<0.000000e+00> : vector<32x8xf32>
    %24 = tpu.matmul %23, %19, %cst_19 {dimension_numbers = #tpu.dot_dimension_numbers<[1], [0], [0], [1], [0, 0, 1, 1], [], []>} : vector<32x2xf32>, vector<2x8xf32>, vector<32x8xf32> -> vector<32x8xf32>
    %c0_20 = arith.constant 0 : index
    %c0_21 = arith.constant 0 : index
    %25 = vector.load %arg9[%c0_20, %c0_21] : memref<32x1xf32, #tpu.memory_space<vmem>>, vector<32x1xf32>
    %26 = vector.broadcast %25 : vector<32x1xf32> to vector<32x8xf32>
    %27 = arith.addf %24, %26 : vector<32x8xf32>
    %c0_22 = arith.constant 0 : index
    %c0_23 = arith.constant 0 : index
    %28 = vector.load %arg6[%c0_22, %c0_23] : memref<32x2xf32, #tpu.memory_space<vmem>>, vector<32x1xf32>
    %29 = vector.shape_cast %28 : vector<32x1xf32> to vector<32x1xf32>
    %30 = vector.broadcast %29 : vector<32x1xf32> to vector<32x8xf32>
    %c0_24 = arith.constant 0 : index
    %c1 = arith.constant 1 : index
    %31 = vector.load %arg6[%c0_24, %c1] : memref<32x2xf32, #tpu.memory_space<vmem>>, vector<32x1xf32>
    %32 = vector.shape_cast %31 : vector<32x1xf32> to vector<32x1xf32>
    %33 = vector.broadcast %32 : vector<32x1xf32> to vector<32x8xf32>
    %c0_25 = arith.constant 0 : index
    %c0_26 = arith.constant 0 : index
    %34 = vector.load %arg10[%c0_25, %c0_26] : memref<2x32xf32, #tpu.memory_space<vmem>>, vector<2x32xf32>
    %c0_27 = arith.constant 0 : index
    %c0_28 = arith.constant 0 : index
    %35 = vector.load %arg11[%c0_27, %c0_28] : memref<2x1xf32, #tpu.memory_space<vmem>>, vector<2x1xf32>
    %36 = vector.extract_strided_slice %20 {offsets = [0, 0], sizes = [2, 8], strides = [1, 1]} : vector<2x24xf32> to vector<2x8xf32>
    %37 = vector.extract_strided_slice %20 {offsets = [0, 8], sizes = [2, 8], strides = [1, 1]} : vector<2x24xf32> to vector<2x8xf32>
    %38 = vector.extract_strided_slice %20 {offsets = [0, 16], sizes = [2, 8], strides = [1, 1]} : vector<2x24xf32> to vector<2x8xf32>
    %39 = vector.extract_strided_slice %22 {offsets = [0, 0], sizes = [32, 8], strides = [1, 1]} : vector<32x24xf32> to vector<32x8xf32>
    %40 = arith.addf %27, %39 : vector<32x8xf32>
    %41 = vector.extract_strided_slice %22 {offsets = [0, 8], sizes = [32, 8], strides = [1, 1]} : vector<32x24xf32> to vector<32x8xf32>
    %42 = arith.addf %27, %41 : vector<32x8xf32>
    %43 = vector.extract_strided_slice %22 {offsets = [0, 16], sizes = [32, 8], strides = [1, 1]} : vector<32x24xf32> to vector<32x8xf32>
    %44 = arith.addf %27, %43 : vector<32x8xf32>
    %45 = tpu.concatenate %18, %19 in 0 : vector<2x8xf32>, vector<2x8xf32> -> vector<4x8xf32>
    %46 = vector.extract_strided_slice %18 {offsets = [0, 0], sizes = [1, 8], strides = [1, 1]} : vector<2x8xf32> to vector<1x8xf32>
    %47 = vector.broadcast %46 : vector<1x8xf32> to vector<32x8xf32>
    %48 = arith.mulf %47, %30 : vector<32x8xf32>
    %49 = arith.addf %40, %48 : vector<32x8xf32>
    %50 = vector.extract_strided_slice %18 {offsets = [1, 0], sizes = [1, 8], strides = [1, 1]} : vector<2x8xf32> to vector<1x8xf32>
    %51 = vector.broadcast %50 : vector<1x8xf32> to vector<32x8xf32>
    %52 = arith.mulf %51, %33 : vector<32x8xf32>
    %53 = arith.addf %49, %52 : vector<32x8xf32>
    %cst_29 = arith.constant 0.000000e+00 : f32
    %54 = vector.broadcast %cst_29 : f32 to vector<32x8xf32>
    %55 = arith.cmpf ogt, %53, %54 : vector<32x8xf32>
    %cst_30 = arith.constant 0.00999999977 : f32
    %56 = vector.broadcast %cst_30 : f32 to vector<32x8xf32>
    %57 = arith.mulf %56, %53 : vector<32x8xf32>
    %58 = arith.select %55, %53, %57 : vector<32x8xi1>, vector<32x8xf32>
    %cst_31 = arith.constant dense<0.000000e+00> : vector<2x8xf32>
    %59 = tpu.matmul %34, %58, %cst_31 {dimension_numbers = #tpu.dot_dimension_numbers<[1], [0], [0], [1], [0, 0, 1, 1], [], []>} : vector<2x32xf32>, vector<32x8xf32>, vector<2x8xf32> -> vector<2x8xf32>
    %60 = vector.broadcast %35 : vector<2x1xf32> to vector<2x8xf32>
    %61 = arith.addf %59, %60 : vector<2x8xf32>
    %62 = arith.negf %61 : vector<2x8xf32>
    %63 = math.exp %62 : vector<2x8xf32>
    %cst_32 = arith.constant 1.000000e+00 : f32
    %64 = vector.broadcast %cst_32 : f32 to vector<2x8xf32>
    %65 = arith.addf %64, %63 : vector<2x8xf32>
    %66 = arith.divf %64, %65 : vector<2x8xf32>
    %cst_33 = arith.constant 1.000000e+00 : f32
    %67 = vector.broadcast %cst_33 : f32 to vector<2x8xf32>
    %68 = arith.subf %67, %66 : vector<2x8xf32>
    %69 = arith.mulf %68, %36 : vector<2x8xf32>
    %70 = arith.addf %18, %69 : vector<2x8xf32>
    %71 = tpu.concatenate %70, %19 in 0 : vector<2x8xf32>, vector<2x8xf32> -> vector<4x8xf32>
    %72 = vector.extract_strided_slice %70 {offsets = [0, 0], sizes = [1, 8], strides = [1, 1]} : vector<2x8xf32> to vector<1x8xf32>
    %73 = vector.broadcast %72 : vector<1x8xf32> to vector<32x8xf32>
    %74 = arith.mulf %73, %30 : vector<32x8xf32>
    %75 = arith.addf %42, %74 : vector<32x8xf32>
    %76 = vector.extract_strided_slice %70 {offsets = [1, 0], sizes = [1, 8], strides = [1, 1]} : vector<2x8xf32> to vector<1x8xf32>
    %77 = vector.broadcast %76 : vector<1x8xf32> to vector<32x8xf32>
    %78 = arith.mulf %77, %33 : vector<32x8xf32>
    %79 = arith.addf %75, %78 : vector<32x8xf32>
    %cst_34 = arith.constant 0.000000e+00 : f32
    %80 = vector.broadcast %cst_34 : f32 to vector<32x8xf32>
    %81 = arith.cmpf ogt, %79, %80 : vector<32x8xf32>
    %cst_35 = arith.constant 0.00999999977 : f32
    %82 = vector.broadcast %cst_35 : f32 to vector<32x8xf32>
    %83 = arith.mulf %82, %79 : vector<32x8xf32>
    %84 = arith.select %81, %79, %83 : vector<32x8xi1>, vector<32x8xf32>
    %cst_36 = arith.constant dense<0.000000e+00> : vector<2x8xf32>
    %85 = tpu.matmul %34, %84, %cst_36 {dimension_numbers = #tpu.dot_dimension_numbers<[1], [0], [0], [1], [0, 0, 1, 1], [], []>} : vector<2x32xf32>, vector<32x8xf32>, vector<2x8xf32> -> vector<2x8xf32>
    %86 = vector.broadcast %35 : vector<2x1xf32> to vector<2x8xf32>
    %87 = arith.addf %85, %86 : vector<2x8xf32>
    %88 = arith.negf %87 : vector<2x8xf32>
    %89 = math.exp %88 : vector<2x8xf32>
    %cst_37 = arith.constant 1.000000e+00 : f32
    %90 = vector.broadcast %cst_37 : f32 to vector<2x8xf32>
    %91 = arith.addf %90, %89 : vector<2x8xf32>
    %92 = arith.divf %90, %91 : vector<2x8xf32>
    %cst_38 = arith.constant 1.000000e+00 : f32
    %93 = vector.broadcast %cst_38 : f32 to vector<2x8xf32>
    %94 = arith.subf %93, %92 : vector<2x8xf32>
    %95 = arith.mulf %94, %37 : vector<2x8xf32>
    %96 = arith.addf %70, %95 : vector<2x8xf32>
    %97 = tpu.concatenate %96, %19 in 0 : vector<2x8xf32>, vector<2x8xf32> -> vector<4x8xf32>
    %98 = vector.extract_strided_slice %96 {offsets = [0, 0], sizes = [1, 8], strides = [1, 1]} : vector<2x8xf32> to vector<1x8xf32>
    %99 = vector.broadcast %98 : vector<1x8xf32> to vector<32x8xf32>
    %100 = arith.mulf %99, %30 : vector<32x8xf32>
    %101 = arith.addf %44, %100 : vector<32x8xf32>
    %102 = vector.extract_strided_slice %96 {offsets = [1, 0], sizes = [1, 8], strides = [1, 1]} : vector<2x8xf32> to vector<1x8xf32>
    %103 = vector.broadcast %102 : vector<1x8xf32> to vector<32x8xf32>
    %104 = arith.mulf %103, %33 : vector<32x8xf32>
    %105 = arith.addf %101, %104 : vector<32x8xf32>
    %cst_39 = arith.constant 0.000000e+00 : f32
    %106 = vector.broadcast %cst_39 : f32 to vector<32x8xf32>
    %107 = arith.cmpf ogt, %105, %106 : vector<32x8xf32>
    %cst_40 = arith.constant 0.00999999977 : f32
    %108 = vector.broadcast %cst_40 : f32 to vector<32x8xf32>
    %109 = arith.mulf %108, %105 : vector<32x8xf32>
    %110 = arith.select %107, %105, %109 : vector<32x8xi1>, vector<32x8xf32>
    %cst_41 = arith.constant dense<0.000000e+00> : vector<2x8xf32>
    %111 = tpu.matmul %34, %110, %cst_41 {dimension_numbers = #tpu.dot_dimension_numbers<[1], [0], [0], [1], [0, 0, 1, 1], [], []>} : vector<2x32xf32>, vector<32x8xf32>, vector<2x8xf32> -> vector<2x8xf32>
    %112 = vector.broadcast %35 : vector<2x1xf32> to vector<2x8xf32>
    %113 = arith.addf %111, %112 : vector<2x8xf32>
    %114 = arith.negf %113 : vector<2x8xf32>
    %115 = math.exp %114 : vector<2x8xf32>
    %cst_42 = arith.constant 1.000000e+00 : f32
    %116 = vector.broadcast %cst_42 : f32 to vector<2x8xf32>
    %117 = arith.addf %116, %115 : vector<2x8xf32>
    %118 = arith.divf %116, %117 : vector<2x8xf32>
    %cst_43 = arith.constant 1.000000e+00 : f32
    %119 = vector.broadcast %cst_43 : f32 to vector<2x8xf32>
    %120 = arith.subf %119, %118 : vector<2x8xf32>
    %121 = arith.mulf %120, %38 : vector<2x8xf32>
    %122 = arith.addf %96, %121 : vector<2x8xf32>
    %123 = tpu.concatenate %122, %19 in 0 : vector<2x8xf32>, vector<2x8xf32> -> vector<4x8xf32>
    %124 = tpu.concatenate %45, %71, %97, %123 in 0 : vector<4x8xf32>, vector<4x8xf32>, vector<4x8xf32>, vector<4x8xf32> -> vector<16x8xf32>
    %c0_44 = arith.constant 0 : index
    %c0_45 = arith.constant 0 : index
    %125 = vector.load %arg12[%c0_44, %c0_45] : memref<16x8xf32, #tpu.memory_space<vmem>>, vector<16x8xf32>
    tpu.vector_store %arg12[%c0_44, %c0_45], %124 {strides = array<i32>} : memref<16x8xf32, #tpu.memory_space<vmem>>, vector<16x8xf32>,
    return
  }
}

</mosaic_0001>

<bundles_post_ra>
// kernel: squeeze.0
= control target key start
LH: loop header
LB: loop body
LE: loop exit
PB: predicated region body
PF: predicated region fallthrough
CT: control target
= control target key end

     0   :  { %s759_s12 = smov 3  ;;  %s770_s19 = smov 12  ;;  %vm291_vm0 = vcmask 1043458   ;;  %vm296_vm1 = vcmask 1045508   ;;  %vm301_vm2 = vcmask 1047558   ;;  %vm260_vm3 = vcmask 1047556   ;;  %s898_s0 = inlined_call_operand.vmem [shape: bf16[8,16,16], index: 0, kind: input, shape index: {}]   ;;  %s899_s1 = inlined_call_operand.vmem [shape: bf16[8,256], index: 1, kind: output, shape index: {}]  }
   0x1   :  { %v684_v0 = vld [vmem:[%s898_s0 + $0x38] sm:$0xff]   ;;  %v685_v1 = vld [vmem:[%s898_s0 + $0x30] sm:$0xff]   ;;  %v686_v2 = vld [vmem:[%s898_s0 + $0x28] sm:$0xff]   ;;  %s772_s20 = smov 48  ;;  %s782_s25 = smov 3  ;;  %vm262_vm4 = vcmask 130048  }
   0x2   :  { %v649_v3 = vunpack.c.l.bf16 %v684_v0  ;;  %v650_v4 = vunpack.c.h.bf16 %v684_v0  ;;  %v653_v5 = vunpack.c.l.bf16 %v685_v1  ;;  %v654_v6 = vunpack.c.h.bf16 %v685_v1  ;;  %v687_v7 = vld [vmem:[%s898_s0 + $0x20] sm:$0xff]   ;;  %v688_v8 = vld [vmem:[%s898_s0 + $0x18] sm:$0xff]   ;;  %v689_v9 = vld [vmem:[%s898_s0 + $0x10] sm:$0xff]   ;;  %s784_s26 = smov 12  ;;  %s786_s27 = smov 48 }
   0x3   :  { %v657_v10 = vunpack.c.l.bf16 %v686_v2  ;;  %v658_v11 = vunpack.c.h.bf16 %v686_v2  ;;  %v661_v12 = vunpack.c.l.bf16 %v687_v7  ;;  %v662_v13 = vunpack.c.h.bf16 %v687_v7  ;;  %v690_v14 = vld [vmem:[%s898_s0 + $0x8] sm:$0xff]   ;;  %v676_v15 = vld [vmem:[%s898_s0] sm:$0xff]   ;;  %s780_s0 = smov 192  ;;  %s788_s28 = smov 192 }
   0x4   :  { %21 = vst [vmem:[#allocation1 + $0x78] sm:$0xff] %v650_v4  ;;  %37 = vst [vmem:[#allocation1 + $0x70] sm:$0xff] %v649_v3  ;;  %v665_v16 = vunpack.c.l.bf16 %v688_v8  ;;  %v666_v17 = vunpack.c.h.bf16 %v688_v8  ;;  %v669_v18 = vunpack.c.l.bf16 %v689_v9  ;;  %v670_v19 = vunpack.c.h.bf16 %v689_v9  ;;  %s790_s29 = smov 3  ;;  %s792_s30 = smov 12 }
   0x5   :  { %53 = vst [vmem:[#allocation1 + $0x68] sm:$0xff] %v654_v6  ;;  %69 = vst [vmem:[#allocation1 + $0x60] sm:$0xff] %v653_v5  ;;  %v673_v20 = vunpack.c.l.bf16 %v690_v14  ;;  %v674_v21 = vunpack.c.h.bf16 %v690_v14  ;;  %v677_v22 = vunpack.c.l.bf16 %v676_v15  ;;  %v678_v23 = vunpack.c.h.bf16 %v676_v15  ;;  %s794_s2 = smov 48  ;;  %s796_s3 = smov 192 }
   0x6   :  { %85 = vst [vmem:[#allocation1 + $0x58] sm:$0xff] %v658_v11  ;;  %101 = vst [vmem:[#allocation1 + $0x50] sm:$0xff] %v657_v10  ;;  %s798_s4 = smov 3  ;;  %s800_s5 = smov 12  ;;  %vm305_vm5 = vcmask 1048448   ;;  %vm350_vm6 = vcmask 917248  }
   0x7   :  { %117 = vst [vmem:[#allocation1 + $0x48] sm:$0xff] %v662_v13  ;;  %133 = vst [vmem:[#allocation1 + $0x40] sm:$0xff] %v661_v12  ;;  %s802_s6 = smov 48  ;;  %s804_s7 = smov 192  ;;  %vm395_vm7 = vcmask 786048   ;;  %vm440_vm8 = vcmask 654848  }
   0x8   :  { %149 = vst [vmem:[#allocation1 + $0x38] sm:$0xff] %v666_v17  ;;  %165 = vst [vmem:[#allocation1 + $0x30] sm:$0xff] %v665_v16  ;;  %s806_s8 = smov 3  ;;  %s808_s9 = smov 12  ;;  %vm485_vm9 = vcmask 523648   ;;  %vm530_vm10 = vcmask 392448  }
   0x9   :  { %181 = vst [vmem:[#allocation1 + $0x28] sm:$0xff] %v670_v19  ;;  %197 = vst [vmem:[#allocation1 + $0x20] sm:$0xff] %v669_v18  ;;  %s810_s10 = smov 48  ;;  %s812_s11 = smov 192  ;;  %vm575_vm11 = vcmask 261248  }
   0xa   :  { %213 = vst [vmem:[#allocation1 + $0x18] sm:$0xff] %v674_v21  ;;  %229 = vst [vmem:[#allocation1 + $0x10] sm:$0xff] %v673_v20  ;;  %s814_s13 = smov 3  ;;  %s816_s14 = smov 12 }
   0xb   :  { %244 = vst [vmem:[#allocation1 + $0x8] sm:$0xff] %v678_v23  ;;  %257 = vst [vmem:[#allocation1] sm:$0xff] %v677_v22  ;;  %s818_s15 = smov 48  ;;  %s366_s16 = smov 192 }
   0xc   :  { %s421_s17 = smov 3  ;;  %s424_s18 = smov 12 }
   0xd   :  { %s734_s21 = smov 80   ;;  %s443_s22 = smov 3 }
   0xe   :  { %s446_s23 = smov 12  ;;  %s451_s24 = smov 48 }
  0x12   :  { %v287_v24 = vld [vmem:[#allocation1 + $0x7] ss:$16 sm:%s759_s12]   ;;  %v309_v29 = vld [vmem:[#allocation1 + $0xf] ss:$16 sm:%s782_s25]   ;;  %v377_v35 = vld [vmem:[#allocation1 + $0x5] ss:$16 sm:%s790_s29]  }
  0x13   :  { %v290_v25 = vld [vmem:[#allocation1 + $0x7] ss:$16 sm:%s770_s19]   ;;  %v312_v30 = vld [vmem:[#allocation1 + $0xf] ss:$16 sm:%s784_s26]   ;;  %v380_v38 = vld [vmem:[#allocation1 + $0x5] ss:$16 sm:%s792_s30]  }
  0x14   :  { %v295_v26 = vld [vmem:[#allocation1 + $0x7] ss:$16 sm:%s772_s20]   ;;  %v292_v27 = vsel %vm291_vm0, %v290_v25, %v287_v24  ;;  %v314_v32 = vsel %vm291_vm0, %v312_v30, %v309_v29  ;;  %v317_v33 = vld [vmem:[#allocation1 + $0xf] ss:$16 sm:%s786_s27]   ;;  %v385_v39 = vld [vmem:[#allocation1 + $0x5] ss:$16 sm:%s794_s2]   ;;  %v382_v42 = vsel %vm291_vm0, %v380_v38, %v377_v35 }
  0x15   :  { %v300_v28 = vld [vmem:[#allocation1 + $0x7] ss:$16 sm:%s780_s0]   ;;  %v297_v31 = vsel %vm296_vm1, %v295_v26, %v292_v27  ;;  %v322_v34 = vld [vmem:[#allocation1 + $0xf] ss:$16 sm:%s788_s28]   ;;  %v319_v37 = vsel %vm296_vm1, %v317_v33, %v314_v32  ;;  %v390_v40 = vld [vmem:[#allocation1 + $0x5] ss:$16 sm:%s796_s3]   ;;  %v387_v47 = vsel %vm296_vm1, %v385_v39, %v382_v42 }
  0x16   :  { %v302_v36 = vsel %vm301_vm2, %v300_v28, %v297_v31  ;;  %v324_v41 = vsel %vm301_vm2, %v322_v34, %v319_v37  ;;  %v399_v43 = vld [vmem:[#allocation1 + $0xd] ss:$16 sm:%s798_s4]   ;;  %v332_v50 = vld [vmem:[#allocation1 + $0x6] ss:$16 sm:%s806_s8]   ;;  %v392_v52 = vsel %vm301_vm2, %v390_v40, %v387_v47  ;;  %v354_v57 = vld [vmem:[#allocation1 + $0xe] ss:$16 sm:%s814_s13]  }
  0x17   :  { %v402_v44 = vld [vmem:[#allocation1 + $0xd] ss:$16 sm:%s800_s5]   ;;  %v698_v46 = vpack.i.bf16 %v324_v41, %v302_v36  ;;  %v335_v51 = vld [vmem:[#allocation1 + $0x6] ss:$16 sm:%s808_s9]   ;;  %s733_s12 = smov 112   ;;  %s429_s19 = smov 48 }
  0x18   :  { %v407_v45 = vld [vmem:[#allocation1 + $0xd] ss:$16 sm:%s802_s6]   ;;  %v404_v48 = vsel %vm291_vm0, %v402_v44, %v399_v43  ;;  %v337_v54 = vsel %vm291_vm0, %v335_v51, %v332_v50  ;;  %v340_v55 = vld [vmem:[#allocation1 + $0x6] ss:$16 sm:%s810_s10]   ;;  %v357_v60 = vld [vmem:[#allocation1 + $0xe] ss:$16 sm:%s816_s14]  }
  0x19   :  { %v412_v49 = vld [vmem:[#allocation1 + $0xd] ss:$16 sm:%s804_s7]   ;;  %v409_v53 = vsel %vm296_vm1, %v407_v45, %v404_v48  ;;  %v345_v56 = vld [vmem:[#allocation1 + $0x6] ss:$16 sm:%s812_s11]   ;;  %699 = vrot.lane.b32.xlu0 %v698_v46, %s733_s12  ;;  %v342_v59 = vsel %vm296_vm1, %v340_v55, %v337_v54  ;;  %v362_v61 = vld [vmem:[#allocation1 + $0xe] ss:$16 sm:%s818_s15]   ;;  %v359_v0 = vsel %vm291_vm0, %v357_v60, %v354_v57 }
  0x1a   :  { %v414_v58 = vsel %vm301_vm2, %v412_v49, %v409_v53  ;;  %v347_v63 = vsel %vm301_vm2, %v345_v56, %v342_v59  ;;  %v367_v1 = vld [vmem:[#allocation1 + $0xe] ss:$16 sm:%s366_s16]   ;;  %v422_v2 = vld [vmem:[#allocation1 + $0x4] ss:$16 sm:%s421_s17]   ;;  %v364_v3 = vsel %vm296_vm1, %v362_v61, %v359_v0  ;;  %s434_s20 = smov 192  ;;  %s456_s0 = smov 192 }
  0x1b   :  { %v708_v62 = vpack.i.bf16 %v414_v58, %v392_v52  ;;  %v425_v4 = vld [vmem:[#allocation1 + $0x4] ss:$16 sm:%s424_s18]   ;;  %v369_v6 = vsel %vm301_vm2, %v367_v1, %v364_v3  ;;  %v444_v11 = vld [vmem:[#allocation1 + $0xc] ss:$16 sm:%s443_s22]   ;;  %s466_s25 = smov 3  ;;  %s469_s26 = smov 12 }
  0x1c   :  { %v430_v5 = vld [vmem:[#allocation1 + $0x4] ss:$16 sm:%s429_s19]   ;;  %v427_v7 = vsel %vm291_vm0, %v425_v4, %v422_v2  ;;  %v703_v9 = vpack.i.bf16 %v369_v6, %v347_v63  ;;  %v447_v12 = vld [vmem:[#allocation1 + $0xc] ss:$16 sm:%s446_s23]   ;;  %s735_s27 = smov 96   ;;  %s474_s28 = smov 48 }
  0x1d   :  { %709 = vrot.lane.b32.xlu1 %v708_v62, %s734_s21  ;;  %v435_v8 = vld [vmem:[#allocation1 + $0x4] ss:$16 sm:%s434_s20]   ;;  %v432_v10 = vsel %vm296_vm1, %v430_v5, %v427_v7  ;;  %v449_v14 = vsel %vm291_vm0, %v447_v12, %v444_v11  ;;  %v452_v15 = vld [vmem:[#allocation1 + $0xc] ss:$16 sm:%s451_s24]   ;;  %v467_v18 = vld [vmem:[#allocation1 + $0x3] ss:$16 sm:%s466_s25]  }
  0x1e   :  { %v437_v13 = vsel %vm301_vm2, %v435_v8, %v432_v10  ;;  %v457_v16 = vld [vmem:[#allocation1 + $0xc] ss:$16 sm:%s456_s0]   ;;  %704 = vrot.lane.b32.xlu0 %v703_v9, %s735_s27  ;;  %v454_v17 = vsel %vm296_vm1, %v452_v15, %v449_v14  ;;  %v470_v19 = vld [vmem:[#allocation1 + $0x3] ss:$16 sm:%s469_s26]   ;;  %s479_s29 = smov 192  ;;  %s488_s30 = smov 3 }
  0x1f   :  { %v459_v20 = vsel %vm301_vm2, %v457_v16, %v454_v17  ;;  %v472_v21 = vsel %vm291_vm0, %v470_v19, %v467_v18  ;;  %v475_v22 = vld [vmem:[#allocation1 + $0x3] ss:$16 sm:%s474_s28]   ;;  %v489_v26 = vld [vmem:[#allocation1 + $0xb] ss:$16 sm:%s488_s30]   ;;  %s491_s2 = smov 12  ;;  %s496_s3 = smov 48 }
  0x20   :  { %v480_v23 = vld [vmem:[#allocation1 + $0x3] ss:$16 sm:%s479_s29]   ;;  %v713_v24 = vpack.i.bf16 %v459_v20, %v437_v13  ;;  %v477_v25 = vsel %vm296_vm1, %v475_v22, %v472_v21  ;;  %v492_v27 = vld [vmem:[#allocation1 + $0xb] ss:$16 sm:%s491_s2]   ;;  %s501_s4 = smov 192  ;;  %s511_s5 = smov 3 }
  0x21   :  { %v497_v28 = vld [vmem:[#allocation1 + $0xb] ss:$16 sm:%s496_s3]   ;;  %s736_s6 = smov 64   ;;  %v482_v29 = vsel %vm301_vm2, %v480_v23, %v477_v25  ;;  %v494_v30 = vsel %vm291_vm0, %v492_v27, %v489_v26  ;;  %v512_v32 = vld [vmem:[#allocation1 + $0x2] ss:$16 sm:%s511_s5]   ;;  %s514_s7 = smov 12 }
  0x22   :  { %714 = vrot.lane.b32.xlu1 %v713_v24, %s736_s6  ;;  %v502_v31 = vld [vmem:[#allocation1 + $0xb] ss:$16 sm:%s501_s4]   ;;  %s519_s8 = smov 48  ;;  %v499_v33 = vsel %vm296_vm1, %v497_v28, %v494_v30  ;;  %v515_v34 = vld [vmem:[#allocation1 + $0x2] ss:$16 sm:%s514_s7]   ;;  %s524_s9 = smov 192 }
  0x23   :  { %v520_v35 = vld [vmem:[#allocation1 + $0x2] ss:$16 sm:%s519_s8]   ;;  %v504_v36 = vsel %vm301_vm2, %v502_v31, %v499_v33  ;;  %v517_v37 = vsel %vm291_vm0, %v515_v34, %v512_v32  ;;  %s533_s10 = smov 3  ;;  %s536_s11 = smov 12 }
  0x24   :  { %v525_v38 = vld [vmem:[#allocation1 + $0x2] ss:$16 sm:%s524_s9]   ;;  %v718_v39 = vpack.i.bf16 %v504_v36, %v482_v29  ;;  %v522_v40 = vsel %vm296_vm1, %v520_v35, %v517_v37  ;;  %v534_v41 = vld [vmem:[#allocation1 + $0xa] ss:$16 sm:%s533_s10]   ;;  %s541_s13 = smov 48  ;;  %s546_s14 = smov 192 }
  0x25   :  { %v537_v42 = vld [vmem:[#allocation1 + $0xa] ss:$16 sm:%s536_s11]   ;;  %v527_v43 = vsel %vm301_vm2, %v525_v38, %v522_v40  ;;  %s556_s15 = smov 3  ;;  %s559_s12 = smov 12 }
  0x26   :  { %v539_v44 = vsel %vm291_vm0, %v537_v42, %v534_v41  ;;  %v542_v45 = vld [vmem:[#allocation1 + $0xa] ss:$16 sm:%s541_s13]   ;;  %s737_s16 = smov 48   ;;  %v557_v48 = vld [vmem:[#allocation1 + $0x1] ss:$16 sm:%s556_s15]   ;;  %s564_s17 = smov 48 }
  0x27   :  { %v547_v46 = vld [vmem:[#allocation1 + $0xa] ss:$16 sm:%s546_s14]   ;;  %719 = vrot.lane.b32.xlu0 %v718_v39, %s737_s16  ;;  %v544_v47 = vsel %vm296_vm1, %v542_v45, %v539_v44  ;;  %v560_v49 = vld [vmem:[#allocation1 + $0x1] ss:$16 sm:%s559_s12]   ;;  %s569_s18 = smov 192  ;;  %s578_s19 = smov 3 }
  0x28   :  { %v259_v50 = vld [vmem:[#allocation1] ss:$8 sm:$0xf0]   ;;  %v549_v51 = vsel %vm301_vm2, %v547_v46, %v544_v47  ;;  %v562_v52 = vsel %vm291_vm0, %v560_v49, %v557_v48  ;;  %v565_v53 = vld [vmem:[#allocation1 + $0x1] ss:$16 sm:%s564_s17]   ;;  %s581_s20 = smov 12 }
  0x29   :  { %v570_v54 = vld [vmem:[#allocation1 + $0x1] ss:$16 sm:%s569_s18]   ;;  %v271_v55 = vld [vmem:[#allocation1 + $0x40] ss:$8 sm:$0xf]   ;;  %v723_v56 = vpack.i.bf16 %v549_v51, %v527_v43  ;;  %v567_v57 = vsel %vm296_vm1, %v565_v53, %v562_v52  ;;  %s586_s21 = smov 48 }
  0x2a   :  { %v579_v58 = vld [vmem:[#allocation1 + $0x9] ss:$16 sm:%s578_s19]   ;;  %s591_s22 = smov 192  ;;  %s738_s23 = smov 32   ;;  %v572_v61 = vsel %vm301_vm2, %v570_v54, %v567_v57 }
  0x2b   :  { %v582_v59 = vld [vmem:[#allocation1 + $0x9] ss:$16 sm:%s581_s20]   ;;  %724 = vrot.lane.b32.xlu1 %v723_v56, %s738_s23  ;;  %v258_v0 = vld [vmem:[#allocation1] ss:$8 sm:$0xf]   ;;  %s739_s24 = smov 16  }
  0x2c   :  { %v587_v60 = vld [vmem:[#allocation1 + $0x9] ss:$16 sm:%s586_s21]   ;;  %v584_v62 = vsel %vm291_vm0, %v582_v59, %v579_v58  ;;  %v261_v2 = vsel %vm260_vm3, %v259_v50, %v258_v0  ;;  %v273_v3 = vld [vmem:[#allocation1 + $0x40] ss:$8 sm:$0xf0]  }
  0x2d   :  { %v592_v63 = vld [vmem:[#allocation1 + $0x9] ss:$16 sm:%s591_s22]   ;;  %v589_v1 = vsel %vm296_vm1, %v587_v60, %v584_v62  ;;  %263 = vst.msk [vmem:[#allocation0] ss:$8 sm:$0x3] %vm262_vm4, %v261_v2   ;;  %v275_v5 = vsel %vm260_vm3, %v273_v3, %v271_v55 }
  0x2e   :  { %v594_v4 = vsel %vm301_vm2, %v592_v63, %v589_v1  ;;  %265 = vst.msk [vmem:[#allocation0 - $0xf] ss:$8 sm:$0xc] %vm262_vm4, %v261_v2   ;;  %267 = vst.msk [vmem:[#allocation0 - $0x1e] ss:$8 sm:$0x30] %vm262_vm4, %v261_v2  }
  0x2f   :  { %269 = vst.msk [vmem:[#allocation0 - $0x2d] ss:$8 sm:$0xc0] %vm262_vm4, %v261_v2   ;;  %v728_v6 = vpack.i.bf16 %v594_v4, %v572_v61  ;;  %278 = vst.msk [vmem:[#allocation0 + $0x4] ss:$8 sm:$0x3] %vm262_vm4, %v275_v5  }
  0x30   :  { %280 = vst.msk [vmem:[#allocation0 - $0xb] ss:$8 sm:$0xc] %vm262_vm4, %v275_v5   ;;  %282 = vst.msk [vmem:[#allocation0 - $0x1a] ss:$8 sm:$0x30] %vm262_vm4, %v275_v5  }
  0x31   :  { %284 = vst.msk [vmem:[#allocation0 - $0x29] ss:$8 sm:$0xc0] %vm262_vm4, %v275_v5   ;;  %729 = vrot.lane.b32.xlu0 %v728_v6, %s739_s24 }
  0x8b   :  { %v700_v7 = vpop.permute.xlu0 %699 }
  0x8c   :  { %v702_v8 = vunpack.i.h.bf16 %v700_v7  ;;  %v701_v9 = vunpack.i.l.bf16 %v700_v7 }
  0x8e   :  { %306 = vst.msk [vmem:[#allocation0] sm:$0xff] %vm305_vm5, %v701_v9   ;;  %329 = vst.msk [vmem:[#allocation0 + $0x8] sm:$0xff] %vm305_vm5, %v702_v8  }
  0x8f   :  { %v710_v10 = vpop.permute.xlu1 %709 }
  0x90   :  { %v705_v11 = vpop.permute.xlu0 %704  ;;  %v712_v14 = vunpack.i.h.bf16 %v710_v10  ;;  %v711_v15 = vunpack.i.l.bf16 %v710_v10 }
  0x91   :  { %v707_v12 = vunpack.i.h.bf16 %v705_v11  ;;  %v706_v13 = vunpack.i.l.bf16 %v705_v11 }
  0x93   :  { %351 = vst.msk [vmem:[#allocation0] sm:$0xff] %vm350_vm6, %v706_v13   ;;  %374 = vst.msk [vmem:[#allocation0 + $0x8] sm:$0xff] %vm350_vm6, %v707_v12  }
  0x94   :  { %396 = vst.msk [vmem:[#allocation0] sm:$0xff] %vm395_vm7, %v711_v15   ;;  %419 = vst.msk [vmem:[#allocation0 + $0x8] sm:$0xff] %vm395_vm7, %v712_v14   ;;  %v715_v16 = vpop.permute.xlu1 %714 }
  0x95   :  { %v717_v17 = vunpack.i.h.bf16 %v715_v16  ;;  %v716_v18 = vunpack.i.l.bf16 %v715_v16 }
  0x97   :  { %441 = vst.msk [vmem:[#allocation0] sm:$0xff] %vm440_vm8, %v716_v18   ;;  %464 = vst.msk [vmem:[#allocation0 + $0x8] sm:$0xff] %vm440_vm8, %v717_v17  }
  0x99   :  { %v720_v19 = vpop.permute.xlu0 %719 }
  0x9a   :  { %v722_v20 = vunpack.i.h.bf16 %v720_v19  ;;  %v721_v21 = vunpack.i.l.bf16 %v720_v19 }
  0x9c   :  { %486 = vst.msk [vmem:[#allocation0] sm:$0xff] %vm485_vm9, %v721_v21   ;;  %509 = vst.msk [vmem:[#allocation0 + $0x8] sm:$0xff] %vm485_vm9, %v722_v20  }
  0x9d   :  { %v725_v22 = vpop.permute.xlu1 %724 }
  0x9e   :  { %v727_v23 = vunpack.i.h.bf16 %v725_v22  ;;  %v726_v24 = vunpack.i.l.bf16 %v725_v22 }
  0xa0   :  { %531 = vst.msk [vmem:[#allocation0] sm:$0xff] %vm530_vm10, %v726_v24   ;;  %554 = vst.msk [vmem:[#allocation0 + $0x8] sm:$0xff] %vm530_vm10, %v727_v23  }
  0xa3   :  { %v730_v25 = vpop.permute.xlu0 %729 }
  0xa4   :  { %v732_v26 = vunpack.i.h.bf16 %v730_v25  ;;  %v731_v27 = vunpack.i.l.bf16 %v730_v25 }
  0xa6   :  { %576 = vst.msk [vmem:[#allocation0] sm:$0xff] %vm575_vm11, %v731_v27   ;;  %599 = vst.msk [vmem:[#allocation0 + $0x8] sm:$0xff] %vm575_vm11, %v732_v26  }
  0xad   :  { %v605_v28 = vld [vmem:[#allocation0] sm:$0xff]  ;;  %v611_v29 = vld [vmem:[#allocation0 + $0x8] sm:$0xff] }
  0xae   :  { %v682_v30 = vpack.c.bf16 %v611_v29, %v605_v28 }
  0xb0   :  { %683 = vst [vmem:[%s899_s1] sm:$0xff] %v682_v30  }

// kernel: ball_jepa_forward.1
= control target key start
LH: loop header
LB: loop body
LE: loop exit
PB: predicated region body
PF: predicated region fallthrough
CT: control target
= control target key end

     0   :  { %v1380_v2 = vmov 0   ;;  %s1815_s0 = inlined_call_operand.vmem [shape: bf16[256,16], index: 0, kind: input, shape index: {}]   ;;  %s1816_s1 = inlined_call_operand.vmem [shape: f32[2,24], index: 1, kind: input, shape index: {}]   ;;  %s1817_s2 = inlined_call_operand.vmem [shape: bf16[64,256], index: 2, kind: input, shape index: {}]   ;;  %s1818_s3 = inlined_call_operand.vmem [shape: f32[64,1], index: 3, kind: input, shape index: {}]   ;;  %s1819_s4 = inlined_call_operand.vmem [shape: bf16[4,64], index: 4, kind: input, shape index: {}]   ;;  %s1820_s5 = inlined_call_operand.vmem [shape: f32[4,1], index: 5, kind: input, shape index: {}]   ;;  %s1821_s6 = inlined_call_operand.vmem [shape: f32[32,2], index: 6, kind: input, shape index: {}]   ;;  %s1822_s7 = inlined_call_operand.vmem [shape: f32[32,2], index: 7, kind: input, shape index: {}]   ;;  %s1823_s8 = inlined_call_operand.vmem [shape: f32[32,2], index: 8, kind: input, shape index: {}]   ;;  %s1824_s9 = inlined_call_operand.vmem [shape: f32[32,1], index: 9, kind: input, shape index: {}]   ;;  %s1825_s10 = inlined_call_operand.vmem [shape: f32[2,32], index: 10, kind: input, shape index: {}]   ;;  %s1826_s11 = inlined_call_operand.vmem [shape: f32[2,1], index: 11, kind: input, shape index: {}]   ;;  %s1827_s12 = inlined_call_operand.hbm [shape: f32[16,8], index: 12, kind: output, shape index: {}]  }
   0x1   :  { %v1316_v0 = vld [vmem:[%s1815_s0 + $0x78] sm:$0xff]   ;;  %1308 = vset.pattern.permute.xlu0 %v1380_v2  ;;  %1309 = vset.pattern.permute.xlu1 %v1380_v2  ;;  %v1318_v3 = vld [vmem:[%s1815_s0 + $0x70] sm:$0xff]   ;;  %v1320_v5 = vld [vmem:[%s1815_s0 + $0x68] sm:$0xff]  }
   0x2   :  { %v1317_v1 = vld [vmem:[%s1815_s0 + $0x38] sm:$0xff]   ;;  %1168 = vmatprep.subr.bf16.mxu0 %v1316_v0  ;;  %v1319_v4 = vld [vmem:[%s1815_s0 + $0x30] sm:$0xff]   ;;  %v1321_v6 = vld [vmem:[%s1815_s0 + $0x28] sm:$0xff]  }
   0x3   :  { %1169 = vmatpush3.bf16.msra.mxu0 %v1317_v1  ;;  %v1322_v7 = vld [vmem:[%s1815_s0 + $0x60] sm:$0xff]   ;;  %v1324_v9 = vld [vmem:[%s1815_s0 + $0x58] sm:$0xff]   ;;  %v1326_v11 = vld [vmem:[%s1815_s0 + $0x50] sm:$0xff]  }
   0x4   :  { %1170 = vmatprep.subr.bf16.mxu0 %v1318_v3  ;;  %v1323_v8 = vld [vmem:[%s1815_s0 + $0x20] sm:$0xff]   ;;  %v1325_v10 = vld [vmem:[%s1815_s0 + $0x18] sm:$0xff]   ;;  %v1327_v13 = vld [vmem:[%s1815_s0 + $0x10] sm:$0xff]  }
   0x5   :  { %v1334_v12 = vld [vmem:[%s1817_s2 + $0x4] ss:$8 sps:$4 sm:$0xff]   ;;  %v89_v15 = vld [vmem:[%s1818_s3 + $0x30] sm:$0xff]  ;;  %v90_v18 = vld [vmem:[%s1818_s3 + $0x38] sm:$0xff] }
   0x6   :  { %299 = vmatprep.mubr.bf16.mxu0 %v1334_v12  ;;  %v1328_v14 = vld [vmem:[%s1815_s0 + $0x48] sm:$0xff]   ;;  %123 = vperm.xlu0 %1308, %v89_v15   ;;  %v87_v16 = vld [vmem:[%s1818_s3 + $0x20] sm:$0xff] }
   0x7   :  { %1171 = vmatpush3.bf16.msra.mxu0 %v1319_v4  ;;  %v1329_v17 = vld [vmem:[%s1815_s0 + $0x8] sm:$0xff]   ;;  %113 = vperm.xlu1 %1309, %v87_v16   ;;  %v1330_v19 = vld [vmem:[%s1815_s0 + $0x40] sm:$0xff]  }
   0x8   :  { %1172 = vmatprep.subr.bf16.mxu0 %v1320_v5  ;;  %v88_v20 = vld [vmem:[%s1818_s3 + $0x28] sm:$0xff] }
   0xb   :  { %1173 = vmatpush3.bf16.msra.mxu0 %v1321_v6 }
   0xc   :  { %1174 = vmatprep.subr.bf16.mxu0 %v1322_v7 }
   0xf   :  { %1175 = vmatpush3.bf16.msra.mxu0 %v1323_v8 }
  0x10   :  { %1176 = vmatprep.subr.bf16.mxu0 %v1324_v9 }
  0x13   :  { %1177 = vmatpush3.bf16.msra.mxu0 %v1325_v10 }
  0x14   :  { %1178 = vmatprep.subr.bf16.mxu0 %v1326_v11 }
  0x17   :  { %1179 = vmatpush3.bf16.msra.mxu0 %v1327_v13 }
  0x18   :  { %1180 = vmatprep.subr.bf16.mxu0 %v1328_v14 }
  0x19   :  { %17 = vsyncpa [#allocation3], 0  ;;  %128 = vperm.xlu0 %1308, %v90_v18   ;;  %v1331_v21 = vld [vmem:[%s1815_s0] sm:$0xff]   ;;  %118 = vperm.xlu1 %1309, %v88_v20   ;;  %v85_v22 = vld [vmem:[%s1818_s3 + $0x10] sm:$0xff]  ;;  %v1381_v38 = vmov 0.0   ;;  %vm1382_vm0 = vmmov 0  }
  0x1a   :  { %v86_v23 = vld [vmem:[%s1818_s3 + $0x18] sm:$0xff]  ;;  %v1332_v24 = vld [vmem:[%s1817_s2] ss:$8 sps:$4 sm:$0xff]   ;;  %v1338_v30 = vld [vmem:[%s1817_s2 + $0x24] ss:$8 sps:$4 sm:$0xff]   ;;  %1238 = vmatprep.subr.bf16.mxu1 %v1381_v38  ;;  %1246 = vmatprep.mubr.msk.bf16.mxu1 %vm1382_vm0, %v1381_v38  ;;  %v1383_v39 = vmov 1  }
  0x1b   :  { %1181 = vmatpush3.bf16.msra.mxu0 %v1329_v17  ;;  %v1335_v25 = vld [vmem:[%s1817_s2 + $0x14] ss:$8 sps:$4 sm:$0xff]   ;;  %v83_v26 = vld [vmem:[%s1818_s3] sm:$0xff]  ;;  %v84_v27 = vld [vmem:[%s1818_s3 + $0x8] sm:$0xff]  ;;  %vm430_vm9 = vcmask 1041408   ;;  %vm367_vm10 = vcmask 523264  }
  0x1c   :  { %1182 = vmatprep.subr.bf16.mxu0 %v1330_v19  ;;  %v361_v28 = vld [vmem:[%s1820_s5] sm:$0xf]  ;;  %v1337_v29 = vld [vmem:[%s1817_s2 + $0x10] ss:$8 sps:$4 sm:$0xff]   ;;  %v1341_v34 = vld [vmem:[%s1817_s2 + $0x34] ss:$8 sps:$4 sm:$0xff]  }
  0x1d   :  { %103 = vperm.xlu0 %1308, %v85_v22   ;;  %108 = vperm.xlu1 %1309, %v86_v23   ;;  %v526_v31 = vld [vmem:[%s1824_s9 + $0x18] sm:$0xff]  ;;  %v1340_v33 = vld [vmem:[%s1817_s2 + $0x20] ss:$8 sps:$4 sm:$0xff]   ;;  %v652_v35 = vld [vmem:[%s1821_s6 + $0x10] sm:$0xff]  ;;  %vm417_vm11 = vcmask 15360   ;;  %s1385_s16 = smov 112  }
  0x1e   :  { %v1552_v32 = vld [vmem:[%s1821_s6 + $0x18] sm:$0xff]  ;;  %v523_v36 = vld [vmem:[%s1824_s9] sm:$0xff] }
  0x1f   :  { %1183 = vmatpush3.bf16.msra.mxu0 %v1331_v21  ;;  %v1343_v37 = vld [vmem:[%s1817_s2 + $0x30] ss:$8 sps:$4 sm:$0xff]   ;;  %v1577_v40 = vld [vmem:[%s1821_s6] sm:$0xff] }
  0x21   :  { %93 = vperm.xlu0 %1308, %v83_v26   ;;  %98 = vperm.xlu1 %1309, %v84_v27  }
  0x22   :  { %300 = vmatmul.mubr.bf16.vlgmr.msra.gmra.mxu0 %v1332_v24 }
  0x23   :  { %307 = vmatprep.mubr.bf16.mxu0 %v1335_v25 }
  0x25   :  { %364 = vperm.xlu0 %1308, %v361_v28  }
  0x29   :  { %544 = vperm.xlu0 %1308, %v526_v31  }
  0x2a   :  { %308 = vmatmul.mubr.bf16.gmra.mxu0 %v1337_v29 }
  0x2b   :  { %315 = vmatprep.mubr.bf16.mxu0 %v1338_v30 }
  0x2d   :  { %671 = vperm.xlu0 %1308, %v1552_v32  }
  0x31   :  { %666 = vperm.xlu0 %1308, %v652_v35  }
  0x32   :  { %316 = vmatmul.mubr.bf16.gmra.mxu0 %v1340_v33 }
  0x33   :  { %323 = vmatprep.mubr.bf16.mxu0 %v1341_v34 }
  0x35   :  { %529 = vperm.xlu0 %1308, %v523_v36  }
  0x39   :  { %1312 = vset.pattern.permute.xlu0 %v1383_v39 }
  0x3a   :  { %324 = vmatmul.mubr.bf16.gmra.mxu0 %v1343_v37  ;;  %683 = vperm.xlu0 %1312, %v652_v35  }
  0x3e   :  { %675 = vperm.xlu0 %1312, %v1577_v40  }
  0x42   :  { %1315 = vset.pattern.permute.xlu0 %v1380_v2 }
  0x81   :  { %v124_v52 = vpop.permute.xlu0 %123 }
  0x82   :  { %v114_v50 = vpop.permute.xlu1 %113 }
  0x94   :  { %v119_v55 = vpop.permute.xlu1 %118  ;;  %v129_v57 = vpop.permute.xlu0 %128 }
  0x98   :  { %v109_v0 = vpop.permute.xlu1 %108  ;;  %v104_v6 = vpop.permute.xlu0 %103 }
  0x9c   :  { %v99_v16 = vpop.permute.xlu1 %98  ;;  %v94_v21 = vpop.permute.xlu0 %93 }
  0xe2   :  { %v1184_v41 = vpop.f32.mrf.mxu0 }
  0xe4   :  { %v1185_v42 = vpop.f32.mrf.mxu0 }
  0xe5   :  { %v1186_v15 = vadd.f32 %v1185_v42, %v1184_v41  ;;  %v1587_v42 = vld [vmem:[%s1816_s1] sm:$0x3] }
  0xe6   :  { %v1187_v43 = vpop.f32.mrf.mxu0 }
  0xe7   :  { %v302_v26 = vadd.f32 %v1186_v15, %v94_v21 }
  0xe8   :  { %v1188_v44 = vpop.f32.mrf.mxu0 }
  0xe9   :  { %v1189_v11 = vadd.f32 %v1188_v44, %v1187_v43  ;;  %v340_v33 = vmul.f32 0.01, %v302_v26  ;;  %vm332_vm8 = vcmp.gt.f32.partialorder %v302_v26, 0.0  ;;  %v356_v43 = vld [vmem:[%s1819_s4] sm:$0x3] }
  0xea   :  { %v1190_v45 = vpop.f32.mrf.mxu0  ;;  %v413_v44 = vld [vmem:[%s1823_s8] sm:$0xff] }
  0xeb   :  { %v305_v23 = vadd.f32 %v1189_v11, %v99_v16  ;;  %v348_v37 = vsel %vm332_vm8, %v302_v26, %v340_v33 }
  0xec   :  { %v1191_v46 = vpop.f32.mrf.mxu0 }
  0xed   :  { %v1192_v7 = vadd.f32 %v1191_v46, %v1190_v45  ;;  %v341_v30 = vmul.f32 0.01, %v305_v23  ;;  %vm333_vm7 = vcmp.gt.f32.partialorder %v305_v23, 0.0  ;;  %v414_v45 = vld [vmem:[%s1823_s8 + $0x8] sm:$0xff]  ;;  %v415_v46 = vld [vmem:[%s1823_s8 + $0x10] sm:$0xff] }
  0xee   :  { %v1193_v47 = vpop.f32.mrf.mxu0 }
  0xef   :  { %v310_v17 = vadd.f32 %v1192_v7, %v104_v6  ;;  %v349_v36 = vsel %vm333_vm7, %v305_v23, %v341_v30  ;;  %v736_v7 = vlaneseq }
  0xf0   :  { %v1194_v48 = vpop.f32.mrf.mxu0  ;;  %v357_v41 = vpack.c.bf16 %v349_v36, %v348_v37 }
  0xf1   :  { %v1195_v3 = vadd.f32 %v1194_v48, %v1193_v47  ;;  %v342_v27 = vmul.f32 0.01, %v310_v17  ;;  %vm334_vm6 = vcmp.gt.f32.partialorder %v310_v17, 0.0  ;;  %v416_v47 = vld [vmem:[%s1823_s8 + $0x18] sm:$0xff]  ;;  %v365_v48 = vpop.permute.xlu0 %364  ;;  %s1384_s8 = smov 120  }
  0xf2   :  { %v1196_v49 = vpop.f32.mrf.mxu0 }
  0xf3   :  { %v313_v12 = vadd.f32 %v1195_v3, %v109_v0  ;;  %v350_v34 = vsel %vm334_vm6, %v310_v17, %v342_v27  ;;  %v691_v0 = vld [vmem:[%s1826_s11] sm:$0x3] }
  0xf4   :  { %v1197_v51 = vpop.f32.mrf.mxu0 }
  0xf5   :  { %v1198_v62 = vadd.f32 %v1197_v51, %v1196_v49  ;;  %v343_v24 = vmul.f32 0.01, %v313_v12  ;;  %vm335_vm5 = vcmp.gt.f32.partialorder %v313_v12, 0.0  ;;  %v545_v3 = vpop.permute.xlu0 %544 }
  0xf6   :  { %v1199_v53 = vpop.f32.mrf.mxu0 }
  0xf7   :  { %v318_v8 = vadd.f32 %v1198_v62, %v114_v50  ;;  %v351_v31 = vsel %vm335_vm5, %v313_v12, %v343_v24  ;;  %v524_v62 = vld [vmem:[%s1824_s9 + $0x8] sm:$0xff] }
  0xf8   :  { %v1200_v54 = vpop.f32.mrf.mxu0  ;;  %v358_v35 = vpack.c.bf16 %v351_v31, %v350_v34 }
  0xf9   :  { %v1201_v59 = vadd.f32 %v1200_v54, %v1199_v53  ;;  %v344_v18 = vmul.f32 0.01, %v318_v8  ;;  %vm336_vm4 = vcmp.gt.f32.partialorder %v318_v8, 0.0  ;;  %v519_v54 = vld [vmem:[%s1822_s7] sm:$0xff] }
  0xfa   :  { %v1202_v56 = vpop.f32.mrf.mxu0 }
  0xfb   :  { %v321_v4 = vadd.f32 %v1201_v59, %v119_v55  ;;  %v352_v28 = vsel %vm336_vm4, %v318_v8, %v344_v18 }
  0xfc   :  { %v1203_v58 = vpop.f32.mrf.mxu0 }
  0xfd   :  { %v1204_v60 = vadd.f32 %v1203_v58, %v1202_v56  ;;  %v345_v13 = vmul.f32 0.01, %v321_v4  ;;  %vm337_vm3 = vcmp.gt.f32.partialorder %v321_v4, 0.0 }
  0xfe   :  { %v1205_v61 = vpop.f32.mrf.mxu0 }
  0xff   :  { %v326_v63 = vadd.f32 %v1204_v60, %v124_v52  ;;  %v353_v25 = vsel %vm337_vm3, %v321_v4, %v345_v13  ;;  %v525_v60 = vld [vmem:[%s1824_s9 + $0x10] sm:$0xff]  ;;  %vm1108_vm3 = vcmask 64512  }
 0x100   :  { %v1206_v1 = vpop.f32.mrf.mxu0  ;;  %v359_v29 = vpack.c.bf16 %v353_v25, %v352_v28 }
 0x101   :  { %v1207_v5 = vadd.f32 %v1206_v1, %v1205_v61  ;;  %v346_v10 = vmul.f32 0.01, %v326_v63  ;;  %vm338_vm1 = vcmp.gt.f32.partialorder %v326_v63, 0.0 }
 0x103   :  { %v329_v9 = vadd.f32 %v1207_v5, %v129_v57  ;;  %v354_v19 = vsel %vm338_vm1, %v326_v63, %v346_v10  ;;  %v651_v63 = vld [vmem:[%s1821_s6 + $0x8] sm:$0xff]  ;;  %v1673_v5 = vpop.permute.xlu0 %671  ;;  %v737_v10 = vshrl.u32 %v736_v7, 7  ;;  %vm777_vm1 = vcmask 261120  }
 0x105   :  { %vm339_vm2 = vcmp.gt.f32.partialorder %v329_v9, 0.0  ;;  %v347_v14 = vmul.f32 0.01, %v329_v9  ;;  %v1681_v12 = vsub.s32 0, %v737_v10  ;;  %v1687_v17 = vsub.s32 1, %v737_v10 }
 0x107   :  { %v355_v20 = vsel %vm339_vm2, %v329_v9, %v347_v14  ;;  %v1677_v8 = vpop.permute.xlu0 %666  ;;  %vm1105_vm2 = vcmask 1043456  }
 0x108   :  { %v360_v22 = vpack.c.bf16 %v355_v20, %v354_v19 }
 0x10a   :  { %1239 = vmatpush3.bf16.msra.mxu1 %v360_v22 }
 0x10b   :  { %1240 = vmatprep.subr.bf16.mxu1 %v1381_v38  ;;  %v530_v11 = vpop.permute.xlu0 %529 }
 0x10e   :  { %1241 = vmatpush3.bf16.msra.mxu1 %v359_v29 }
 0x10f   :  { %1242 = vmatprep.subr.bf16.mxu1 %v1381_v38  ;;  %v1689_v18 = vpop.permute.xlu0 %683 }
 0x112   :  { %1243 = vmatpush3.bf16.msra.mxu1 %v358_v35 }
 0x113   :  { %1244 = vmatprep.subr.bf16.mxu1 %v1381_v38  ;;  %v1712_v35 = vpop.permute.xlu0 %675 }
 0x116   :  { %1245 = vmatpush3.bf16.msra.mxu1 %v357_v41 }
 0x117   :  { %1250 = vmatprep.subr.msk.mxu1 %vm430_vm9, %v1587_v42 }
 0x119   :  { %1247 = vmatmul.mubr.msk.bf16.vlgmr.msra.gmra.mxu1 %vm367_vm10, %v356_v43 }
 0x11a   :  { %1251 = vmatpush3.msk.msra.mxu1 %vm430_vm9, %v1587_v42  ;;  %1252 = vmatprep.mubr.msk.f32.mxu1 %vm417_vm11, %v413_v44 }
 0x121   :  { %1253 = vmatmul.mubr.msk.f32.vlgmr.msra.gmra.mxu1 %vm417_vm11, %v414_v45 }
 0x122   :  { %1255 = vmatprep.mubr.msk.f32.mxu1 %vm417_vm11, %v415_v46 }
 0x125   :  { %1256 = vmatmul.mubr.msk.f32.gmra.mxu1 %vm417_vm11, %v416_v47 }
 0x126   :  { %1260 = vmatprep.mubr.msk.f32.mxu1 %vm417_vm11, %v519_v54 }
 0x1d9   :  { %v405_v49 = vpop.f32.mrf.mxu1 }
 0x1da   :  { %v406_v50 = vadd.f32 %v405_v49, %v365_v48 }
 0x1db   :  { %v1248_v51 = vpop.f32.mrf.mxu1 }
 0x1dc   :  { %1344 = vtanh.f32 %v406_v50 }
 0x1dd   :  { %v408_v52 = vpop.f32.mrf.mxu1 }
 0x1df   :  { %v1249_v53 = vpop.f32.mrf.mxu1 }
 0x1e1   :  { %v1616_v55 = vpop.f32.mrf.mxu1 }
 0x1e3   :  { %v1618_v56 = vpop.f32.mrf.mxu1 }
 0x1e5   :  { %v1620_v57 = vpop.f32.mrf.mxu1 }
 0x1e6   :  { %706 = vrot.lane.b32.xlu0 %v1620_v57, %s1384_s8 }
 0x1e7   :  { %v1631_v61 = vpop.f32.mrf.mxu1 }
 0x1e9   :  { %v1623_v58 = vpop.eup %1344 }
 0x1ea   :  { %702 = vrot.lane.b32.xlu0 %v1616_v55, %s1384_s8  ;;  %v548_v59 = vrot.slane %v1623_v58, 2  ;;  %v739_v20 = vrot.slane %v1623_v58, %v1681_v12  ;;  %v751_v27 = vrot.slane %v1623_v58, %v1687_v17 }
 0x1ec   :  { %549 = vrot.lane.b32.xlu1 %v548_v59, %s1384_s8  ;;  %v743_v34 = vmul.f32 %v739_v20, %v1673_v5  ;;  %v742_v37 = vmul.f32 %v739_v20, %v1677_v8  ;;  %v754_v46 = vmul.f32 %v751_v27, %v1689_v18  ;;  %v752_v48 = vmul.f32 %v751_v27, %v1712_v35 }
 0x1ee   :  { %974 = vrot.lane.b32.xlu0 %v1587_v42, %s1384_s8 }
 0x1f0   :  { %539 = vperm.xlu1 %1309, %v525_v60  }
 0x1f2   :  { %720 = vrot.lane.b32.xlu0 %v1631_v61, %s1385_s16 }
 0x1f4   :  { %534 = vperm.xlu1 %1309, %v524_v62  }
 0x1f6   :  { %716 = vrot.lane.b32.xlu0 %v1618_v56, %s1385_s16 }
 0x1f8   :  { %1310 = vset.pattern.permute.xlu1 %v1383_v39 }
 0x1f9   :  { %687 = vperm.xlu1 %1310, %v1552_v32  }
 0x1fa   :  { %732 = vrot.lane.b32.xlu0 %v1623_v58, %s1384_s8 }
 0x1fd   :  { %1311 = vset.pattern.permute.xlu1 %v1380_v2 }
 0x1fe   :  { %661 = vperm.xlu1 %1311, %v651_v63  }
 0x202   :  { %656 = vperm.xlu1 %1311, %v1577_v40   ;;  %v522_v40 = vld [vmem:[%s1822_s7 + $0x18] sm:$0xff] }
 0x206   :  { %1313 = vset.pattern.permute.xlu1 %v1383_v39  ;;  %v520_v39 = vld [vmem:[%s1822_s7 + $0x8] sm:$0xff] }
 0x207   :  { %679 = vperm.xlu1 %1313, %v651_v63  }
 0x20b   :  { %1314 = vset.pattern.permute.xlu1 %v1380_v2  ;;  %v521_v2 = vld [vmem:[%s1822_s7 + $0x10] sm:$0xff] }
 0x20c   :  { %774 = vperm.xlu1 %1314, %v691_v0  }
 0x210   :  { %704 = vrot.lane.b32.xlu1 %v1631_v61, %s1384_s8 }
 0x214   :  { %700 = vrot.lane.b32.xlu1 %v1618_v56, %s1384_s8 }
 0x218   :  { %722 = vrot.lane.b32.xlu1 %v1620_v57, %s1385_s16 }
 0x21c   :  { %718 = vrot.lane.b32.xlu1 %v1616_v55, %s1385_s16 }
 0x220   :  { %1093 = vrot.lane.b32.xlu1 %v1587_v42, %s1385_s16 }
 0x25e   :  { %v550_v32 = vpop.permute.xlu1 %549 }
 0x25f   :  { %1258 = vmatprep.subr.msk.mxu1 %vm430_vm9, %v550_v32 }
 0x260   :  { %1259 = vmatpush3.msk.msra.mxu1 %vm430_vm9, %v550_v32 }
 0x261   :  { %1261 = vmatmul.mubr.msk.f32.vlgmr.msra.gmra.mxu1 %vm417_vm11, %v520_v39  ;;  %1266 = vmatprep.subr.mxu1 %v1381_v38 }
 0x262   :  { %1263 = vmatprep.mubr.msk.f32.mxu1 %vm417_vm11, %v521_v2 }
 0x265   :  { %1264 = vmatmul.mubr.msk.f32.gmra.mxu1 %vm417_vm11, %v522_v40  ;;  %v707_v40 = vpop.permute.xlu0 %706 }
 0x266   :  { %1274 = vmatprep.mubr.msk.f32.mxu1 %vm1382_vm0, %v1381_v38 }
 0x26b   :  { %v540_v1 = vpop.permute.xlu1 %539 }
 0x26f   :  { %v535_v4 = vpop.permute.xlu1 %534 }
 0x274   :  { %v1675_v6 = vpop.permute.xlu1 %687 }
 0x275   :  { %v755_v41 = vmul.f32 %v751_v27, %v1675_v6 }
 0x279   :  { %v1679_v9 = vpop.permute.xlu1 %661 }
 0x27a   :  { %v741_v23 = vmul.f32 %v739_v20, %v1679_v9 }
 0x27d   :  { %v1683_v14 = vpop.permute.xlu1 %656 }
 0x27e   :  { %v740_v30 = vmul.f32 %v739_v20, %v1683_v14 }
 0x282   :  { %v1704_v28 = vpop.permute.xlu1 %679 }
 0x283   :  { %v753_v43 = vmul.f32 %v751_v27, %v1704_v28 }
 0x287   :  { %v1734_v63 = vpop.permute.xlu1 %774 }
 0x28b   :  { %v705_v20 = vpop.permute.xlu1 %704 }
 0x321   :  { %v1262_v13 = vpop.f32.mrf.mxu1 }
 0x322   :  { %v1685_v15 = vadd.f32 %v1262_v13, %v535_v4 }
 0x323   :  { %v631_v16 = vpop.f32.mrf.mxu1 }
 0x324   :  { %v1691_v19 = vadd.f32 %v631_v16, %v530_v11  ;;  %v693_v21 = vadd.f32 %v1616_v55, %v1685_v15 }
 0x325   :  { %v1265_v22 = vpop.f32.mrf.mxu1 }
 0x326   :  { %v692_v24 = vadd.f32 %v1691_v19, %v1618_v56  ;;  %v1700_v25 = vadd.f32 %v1265_v22, %v545_v3  ;;  %v745_v31 = vadd.f32 %v741_v23, %v693_v21 }
 0x327   :  { %v641_v26 = vpop.f32.mrf.mxu1 }
 0x328   :  { %v1706_v29 = vadd.f32 %v641_v26, %v540_v1  ;;  %v695_v33 = vadd.f32 %v1620_v57, %v1700_v25  ;;  %v744_v44 = vadd.f32 %v740_v30, %v692_v24  ;;  %v757_v50 = vadd.f32 %v753_v43, %v745_v31  ;;  %v703_v1 = vpop.permute.xlu0 %702 }
 0x329   :  { %v715_v31 = vadd.f32 %v707_v40, %v1700_v25 }
 0x32a   :  { %v694_v36 = vadd.f32 %v1706_v29, %v1631_v61  ;;  %v747_v45 = vadd.f32 %v743_v34, %v695_v33  ;;  %v756_v53 = vadd.f32 %v752_v48, %v744_v44  ;;  %v765_v56 = vmul.f32 0.01, %v757_v50  ;;  %v1726_v61 = vld [vmem:[%s1825_s10] sm:$0x3]  ;;  %v701_v34 = vpop.permute.xlu1 %700  ;;  %s1386_s10 = smov [#allocation2]  }
 0x32b   :  { %vm761_vm14 = vcmp.gt.f32.partialorder %v757_v50, 0.0  ;;  %s1116_s23 = sshll.u32 %s1386_s10, 4  ;;  %s1117_s23 = int_to_ptr.vmem [resolvable:$true] %s1116_s23 }
 0x32c   :  { %v746_v47 = vadd.f32 %v742_v37, %v694_v36  ;;  %v759_v49 = vadd.f32 %v755_v41, %v747_v45  ;;  %v764_v59 = vmul.f32 0.01, %v756_v53  ;;  %vm760_vm15 = vcmp.gt.f32.partialorder %v756_v53, 0.0  ;;  %v1737_v7 = vpop.permute.xlu0 %974  ;;  %s1358_s24 = scalar_lea.vmem %s1117_s23, 256  ;;  %p1363_p1 = scmp.lt.s32.totalorder %s1117_s23, %s1117_s23 }
 0x32d   :  { %v769_v60 = vsel %vm761_vm14, %v757_v50, %v765_v56  ;;  %v714_v36 = vadd.f32 %v705_v20, %v1706_v29  ;;  %v712_v41 = vadd.f32 %v701_v34, %v1691_v19  ;;  %p1359_p0 = scmp.ne.s32.totalorder %s1117_s23, %s1358_s24  ;;  %p1364_p2 = scmp.lt.s32.totalorder %s1358_s24, %s1358_s24 }
 0x32e   :  { %v758_v51 = vadd.f32 %v754_v46, %v746_v47  ;;  %vm763_vm12 = vcmp.gt.f32.partialorder %v759_v49, 0.0  ;;  %v767_v52 = vmul.f32 0.01, %v759_v49  ;;  %v768_v62 = vsel %vm760_vm15, %v756_v53, %v764_v59 }
 0x32f   :  { %p1365_p3 = por %p1364_p2, %p1363_p1 }
 0x330   :  { %vm762_vm13 = vcmp.gt.f32.partialorder %v758_v51, 0.0  ;;  %v766_v54 = vmul.f32 0.01, %v758_v51  ;;  %v771_v55 = vsel %vm763_vm12, %v759_v49, %v767_v52  ;;  %v1739_v10 = vpop.permute.xlu0 %720 }
 0x331   :  { %1267 = vmatpush3.msra.mxu1 %v771_v55  ;;  %p1366_p4 = pnand %p1365_p3, %p1359_p0 }
 0x332   :  { %v770_v57 = vsel %vm762_vm13, %v758_v51, %v766_v54  ;;  %1268 = vmatprep.subr.mxu1 %v1381_v38 }
 0x333   :  { %1269 = vmatpush3.msra.mxu1 %v770_v57 }
 0x334   :  { %1270 = vmatprep.subr.mxu1 %v1381_v38  ;;  %v1741_v11 = vpop.permute.xlu0 %716 }
 0x335   :  { %1271 = vmatpush3.msra.mxu1 %v769_v60 }
 0x336   :  { %1272 = vmatprep.subr.mxu1 %v1381_v38 }
 0x337   :  { %1273 = vmatpush3.msra.mxu1 %v768_v62 }
 0x338   :  { %1275 = vmatmul.mubr.msk.f32.vlgmr.msra.gmra.mxu1 %vm777_vm1, %v1726_v61  ;;  %1277 = vmatprep.subr.mxu1 %v1381_v38  ;;  %v1744_v22 = vpop.permute.xlu0 %732 }
 0x339   :  { %1285 = vmatprep.mubr.msk.f32.mxu1 %vm1382_vm0, %v1381_v38  ;;  %v735_v24 = vsel %vm430_vm9, %v1623_v58, %v1744_v22 }
 0x3f8   :  { %v847_v0 = vpop.f32.mrf.mxu1 }
 0x3f9   :  { %v848_v32 = vadd.f32 %v847_v0, %v1734_v63 }
 0x3fa   :  { %v1276_v39 = vpop.f32.mrf.mxu1 }
 0x3fb   :  { %v1163_v2 = vmul.f32 -1.442695, %v848_v32 }
 0x3fd   :  { %1346 = vpow2.f32 %v1163_v2 }
 0x40a   :  { %v1347_v3 = vpop.eup %1346 }
 0x40b   :  { %v854_v4 = vadd.f32 1.0, %v1347_v3 }
 0x40d   :  { %1348 = vrcp.f32 %v854_v4 }
 0x41a   :  { %v1349_v13 = vpop.eup %1348 }
 0x41b   :  { %v857_v16 = vsub.f32 1.0, %v1349_v13 }
 0x41d   :  { %v858_v21 = vmul.f32 %v857_v16, %v1587_v42  ;;  %v713_v42 = vadd.f32 %v703_v1, %v1685_v15 }
 0x41f   :  { %v1747_v23 = vadd.f32 %v1623_v58, %v858_v21 }
 0x421   :  { %v864_v26 = vrot.slane %v1747_v23, %v1681_v12  ;;  %v876_v27 = vrot.slane %v1747_v23, %v1687_v17  ;;  %v860_v30 = vsel %vm430_vm9, %v1747_v23, %v1744_v22 }
 0x422   :  { %v1100_v33 = vrot.slane %v860_v30, 4 }
 0x423   :  { %v868_v58 = vmul.f32 %v864_v26, %v1673_v5  ;;  %v867_v37 = vmul.f32 %v864_v26, %v1677_v8  ;;  %v880_v43 = vmul.f32 %v876_v27, %v1675_v6  ;;  %v866_v44 = vmul.f32 %v864_v26, %v1679_v9 }
 0x424   :  { %v865_v45 = vmul.f32 %v864_v26, %v1683_v14  ;;  %v879_v48 = vmul.f32 %v876_v27, %v1689_v18  ;;  %v1106_v49 = vsel %vm1105_vm2, %v735_v24, %v1100_v33  ;;  %v878_v51 = vmul.f32 %v876_v27, %v1704_v28  ;;  %v723_v24 = vpop.permute.xlu1 %722 }
 0x425   :  { %v872_v46 = vadd.f32 %v868_v58, %v715_v31  ;;  %v871_v47 = vadd.f32 %v867_v37, %v714_v36  ;;  %v870_v50 = vadd.f32 %v866_v44, %v713_v42  ;;  %1109 = vst.msk [vmem:[#allocation2] sm:$0xff] %vm1108_vm3, %v1106_v49  ;;  %v877_v55 = vmul.f32 %v876_v27, %v1712_v35 }
 0x426   :  { %v869_v52 = vadd.f32 %v865_v45, %v712_v41  ;;  %v731_v34 = vadd.f32 %v723_v24, %v1700_v25  ;;  %v730_v36 = vadd.f32 %v1739_v10, %v1706_v29 }
 0x427   :  { %v884_v53 = vadd.f32 %v880_v43, %v872_v46  ;;  %v883_v54 = vadd.f32 %v879_v48, %v871_v47  ;;  %v882_v56 = vadd.f32 %v878_v51, %v870_v50 }
 0x428   :  { %v881_v60 = vadd.f32 %v877_v55, %v869_v52  ;;  %v719_v42 = vpop.permute.xlu1 %718 }
 0x429   :  { %vm888_vm4 = vcmp.gt.f32.partialorder %v884_v53, 0.0  ;;  %v892_v57 = vmul.f32 0.01, %v884_v53  ;;  %v891_v59 = vmul.f32 0.01, %v883_v54  ;;  %vm887_vm5 = vcmp.gt.f32.partialorder %v883_v54, 0.0 }
 0x42a   :  { %v890_v0 = vmul.f32 0.01, %v882_v56  ;;  %vm886_vm6 = vcmp.gt.f32.partialorder %v882_v56, 0.0  ;;  %v889_v39 = vmul.f32 0.01, %v881_v60  ;;  %vm885_vm7 = vcmp.gt.f32.partialorder %v881_v60, 0.0 }
 0x42b   :  { %v896_v62 = vsel %vm888_vm4, %v884_v53, %v892_v57  ;;  %v895_v32 = vsel %vm887_vm5, %v883_v54, %v891_v59  ;;  %v729_v41 = vadd.f32 %v719_v42, %v1685_v15 }
 0x42c   :  { %1278 = vmatpush3.msra.mxu1 %v896_v62  ;;  %v894_v2 = vsel %vm886_vm6, %v882_v56, %v890_v0  ;;  %v893_v40 = vsel %vm885_vm7, %v881_v60, %v889_v39  ;;  %v1094_v55 = vpop.permute.xlu1 %1093 }
 0x42d   :  { %1279 = vmatprep.subr.mxu1 %v1381_v38 }
 0x42e   :  { %1280 = vmatpush3.msra.mxu1 %v895_v32 }
 0x42f   :  { %1281 = vmatprep.subr.mxu1 %v1381_v38 }
 0x430   :  { %1282 = vmatpush3.msra.mxu1 %v894_v2 }
 0x431   :  { %1283 = vmatprep.subr.mxu1 %v1381_v38 }
 0x432   :  { %1284 = vmatpush3.msra.mxu1 %v893_v40 }
 0x433   :  { %1286 = vmatmul.mubr.msk.f32.vlgmr.msra.gmra.mxu1 %vm777_vm1, %v1726_v61  ;;  %1288 = vmatprep.subr.mxu1 %v1381_v38 }
 0x434   :  { %1296 = vmatprep.mubr.msk.f32.mxu1 %vm1382_vm0, %v1381_v38 }
 0x4f3   :  { %v963_v1 = vpop.f32.mrf.mxu1 }
 0x4f4   :  { %v964_v3 = vadd.f32 %v963_v1, %v1734_v63 }
 0x4f5   :  { %v1287_v4 = vpop.f32.mrf.mxu1 }
 0x4f6   :  { %v1165_v13 = vmul.f32 -1.442695, %v964_v3 }
 0x4f8   :  { %1350 = vpow2.f32 %v1165_v13 }
 0x505   :  { %v1351_v16 = vpop.eup %1350 }
 0x506   :  { %v970_v20 = vadd.f32 1.0, %v1351_v16 }
 0x508   :  { %1352 = vrcp.f32 %v970_v20 }
 0x515   :  { %v1353_v21 = vpop.eup %1352 }
 0x516   :  { %v973_v26 = vsub.f32 1.0, %v1353_v21 }
 0x518   :  { %v977_v27 = vmul.f32 %v1737_v7, %v973_v26  ;;  %v728_v7 = vadd.f32 %v1741_v11, %v1691_v19 }
 0x51a   :  { %v978_v30 = vadd.f32 %v977_v27, %v1747_v23 }
 0x51c   :  { %v983_v31 = vrot.slane %v978_v30, %v1681_v12  ;;  %v995_v33 = vrot.slane %v978_v30, %v1687_v17 }
 0x51e   :  { %v987_v58 = vmul.f32 %v983_v31, %v1673_v5  ;;  %v986_v37 = vmul.f32 %v983_v31, %v1677_v8  ;;  %v985_v23 = vmul.f32 %v983_v31, %v1679_v9  ;;  %v984_v12 = vmul.f32 %v983_v31, %v1683_v14 }
 0x51f   :  { %v999_v17 = vmul.f32 %v995_v33, %v1675_v6  ;;  %v998_v44 = vmul.f32 %v995_v33, %v1689_v18  ;;  %v997_v5 = vmul.f32 %v995_v33, %v1704_v28  ;;  %v996_v15 = vmul.f32 %v995_v33, %v1712_v35 }
 0x520   :  { %v991_v43 = vadd.f32 %v987_v58, %v731_v34  ;;  %v990_v25 = vadd.f32 %v986_v37, %v730_v36  ;;  %v989_v29 = vadd.f32 %v985_v23, %v729_v41  ;;  %v988_v10 = vadd.f32 %v984_v12, %v728_v7 }
 0x522   :  { %v1003_v8 = vadd.f32 %v999_v17, %v991_v43  ;;  %v1002_v45 = vadd.f32 %v998_v44, %v990_v25  ;;  %v1001_v46 = vadd.f32 %v997_v5, %v989_v29  ;;  %v1000_v11 = vadd.f32 %v996_v15, %v988_v10 }
 0x524   :  { %vm1007_vm0 = vcmp.gt.f32.partialorder %v1003_v8, 0.0  ;;  %v1011_v19 = vmul.f32 0.01, %v1003_v8  ;;  %v1010_v9 = vmul.f32 0.01, %v1002_v45  ;;  %vm1006_vm8 = vcmp.gt.f32.partialorder %v1002_v45, 0.0 }
 0x525   :  { %v1009_v47 = vmul.f32 0.01, %v1001_v46  ;;  %vm1005_vm10 = vcmp.gt.f32.partialorder %v1001_v46, 0.0  ;;  %v1008_v18 = vmul.f32 0.01, %v1000_v11  ;;  %vm1004_vm11 = vcmp.gt.f32.partialorder %v1000_v11, 0.0 }
 0x526   :  { %v1015_v14 = vsel %vm1007_vm0, %v1003_v8, %v1011_v19  ;;  %v1014_v6 = vsel %vm1006_vm8, %v1002_v45, %v1010_v9 }
 0x527   :  { %1289 = vmatpush3.msra.mxu1 %v1015_v14  ;;  %v1013_v28 = vsel %vm1005_vm10, %v1001_v46, %v1009_v47  ;;  %v1012_v35 = vsel %vm1004_vm11, %v1000_v11, %v1008_v18 }
 0x528   :  { %1290 = vmatprep.subr.mxu1 %v1381_v38 }
 0x529   :  { %1291 = vmatpush3.msra.mxu1 %v1014_v6 }
 0x52a   :  { %1292 = vmatprep.subr.mxu1 %v1381_v38 }
 0x52b   :  { %1293 = vmatpush3.msra.mxu1 %v1013_v28 }
 0x52c   :  { %1294 = vmatprep.subr.mxu1 %v1381_v38 }
 0x52d   :  { %1295 = vmatpush3.msra.mxu1 %v1012_v35 }
 0x52e   :  { %1297 = vmatmul.mubr.msk.f32.vlgmr.msra.gmra.mxu1 %vm777_vm1, %v1726_v61 }
 0x5ee   :  { %v1082_v48 = vpop.f32.mrf.mxu1 }
 0x5ef   :  { %v1083_v49 = vadd.f32 %v1082_v48, %v1734_v63  ;;  %v979_v63 = vsel %vm430_vm9, %v978_v30, %v1744_v22 }
 0x5f0   :  { %v1298_v50 = vpop.f32.mrf.mxu1 }
 0x5f1   :  { %v1167_v51 = vmul.f32 -1.442695, %v1083_v49 }
 0x5f3   :  { %1354 = vpow2.f32 %v1167_v51 }
 0x600   :  { %v1355_v52 = vpop.eup %1354 }
 0x601   :  { %v1089_v53 = vadd.f32 1.0, %v1355_v52 }
 0x603   :  { %1356 = vrcp.f32 %v1089_v53 }
 0x610   :  { %v1357_v54 = vpop.eup %1356 }
 0x611   :  { %v1092_v56 = vsub.f32 1.0, %v1357_v54 }
 0x613   :  { %v1096_v57 = vmul.f32 %v1094_v55, %v1092_v56 }
 0x615   :  { %v1097_v59 = vadd.f32 %v1096_v57, %v978_v30 }
 0x617   :  { %v1098_v38 = vsel %vm430_vm9, %v1097_v59, %v1744_v22 }
 0x618   :  { %v1103_v61 = vrot.slane %v1098_v38, 4 }
 0x61a   :  { %v1107_v60 = vsel %vm1105_vm2, %v979_v63, %v1103_v61 }
 0x61b   :  { %1110 = vst.msk [vmem:[#allocation2 + $0x8] sm:$0xff] %vm1108_vm3, %v1107_v60 }
 0x61c   :  { %1369 = shalt.err (!%p1366_p4)
}
 0x61d   :  { %s1387_s25 = smov 128   ;;  %s1388_s1 = smov 8  }
 0x61e   :  { %1122 = dma.vmem_to_hbm [thread:$0]  %s1117_s23, 256, %s1827_s12, [#allocation3], %s1387_s25, %s1387_s25, %s1388_s1  }
 0x61f   :  { %1378 = dma.done.wait [#allocation3], 256  }
 0x620   :  { %1379 = vsyncadd [#allocation3], 4294967040 }
 0x621   :  { %1126 = vsyncpa [#allocation3], 1 }

</bundles_post_ra>
